<compile_context>
chip_gen: v7x
topology: tpu7x:2x2x1
jax: 0.10.0
libtpu: 0.0.40
codegen_flags: <defaults>
</compile_context>

<pallas_src>
import numpy as np
import jax
import jax.numpy as jnp
from jax.experimental import pallas as pl
from jax.experimental.pallas import tpu as pltpu


# --------------------------------------------------------------------------- #
# small static helpers / per-chip policy
# --------------------------------------------------------------------------- #
def _device_kind():
    try:
        return jax.devices()[0].device_kind.lower()
    except Exception:
        return ""


def _chip_policy():
    kind = _device_kind()
    is_v5e = ("v5 lite" in kind) or ("v5e" in kind) or ("v5litepod" in kind)
    is_v7x = "v7" in kind
    default_scoped = (16 << 20) if is_v5e else (32 << 20)      # default scoped VMEM
    physical = (64 << 20) if is_v7x else (128 << 20)           # physical VMEM / TC
    vmem_cap = physical * 3 // 4        # leave headroom for pipelining / compiler scratch
    mxu_tn = 128 if is_v5e else 256     # v5e MXU 4x128x128; v6e/v7x 2x256x256
    if is_v5e:
        pool_buf_budget = 768 << 10     # ~0.75 MiB / buffer keeps 5 bufs x2 < 16 MiB
    elif is_v7x:
        pool_buf_budget = 3 << 19       # 1.5 MiB
    else:
        pool_buf_budget = 2 << 20
    return dict(default_scoped=default_scoped, vmem_cap=vmem_cap,
                mxu_tn=mxu_tn, pool_buf_budget=pool_buf_budget)


def _largest_divisor_leq(n, cap):
    cap = max(1, cap)
    best = 1
    for d in range(1, n + 1):
        if n % d == 0 and d <= cap:
            best = d
    return best


def _pick_cout_tile(cout, mxu_tn):
    order = (128, 256) if mxu_tn == 128 else (256, 128)
    for tn in order:
        if cout % tn == 0:
            return tn
    return cout  # small / non-128-multiple channel counts: full-Cout block


def _pick_row_chunk(ho, wo, tn, acc_budget=2 << 20):
    """Output rows per accumulation pass: maximize M=TM*Wo under the f32
    accumulator VMEM budget, preferring M a multiple of 8 (unmasked stores)."""
    cap = max(1, acc_budget // max(1, wo * tn * 4))
    cands = [tm for tm in range(1, ho + 1) if ho % tm == 0 and tm <= cap]
    aligned = [tm for tm in cands if (tm * wo) % 8 == 0]
    return max(aligned) if aligned else max(cands)


def _phase_split_nchw(x_nchw):
    """(N, C, 2R, 2S) -> (2, 2, N, R, S, C): (row parity, col parity) NHWC phases."""
    n, c, h, w = x_nchw.shape
    x6 = x_nchw.reshape(n, c, h // 2, 2, w // 2, 2)
    return jnp.transpose(x6, (3, 5, 0, 2, 4, 1))


# --------------------------------------------------------------------------- #
# Pallas kernels
# --------------------------------------------------------------------------- #
def _conv_down_kernel(ee_ref, eo_ref, oe_ref, oo_ref, w_ref, b_ref, o_ref, acc_ref):
    """3x3 stride-2 pad-1 conv; one (Cout-tile, batch) grid step.

    ee/eo/oe/oo : (1, Ho+1, Wo+1, Cin)  phase-split, zero-padded input
    w_ref       : (3, 3, Cin, TN)       Cout tile of the weights
    b_ref       : (1, TN)               f32 bias tile
    o_ref       : (1, Ho*Wo, TN)        flat spatial output tile (lane-dense)
    acc_ref     : (TM*Wo, TN) f32       VMEM accumulator for one row chunk
    """
    Wo = ee_ref.shape[2] - 1
    Cin = ee_ref.shape[3]
    chunk_rows = acc_ref.shape[0]
    TM = chunk_rows // Wo
    n_chunks = o_ref.shape[1] // chunk_rows
    # tap (kh, kw) of the padded input at output pixel (i, j) reads padded
    # row 2i+kh, col 2j+kw  ->  phase (kh%2, kw%2), phase index i+kh//2, j+kw//2
    phases = {(0, 0): ee_ref, (0, 1): eo_ref, (1, 0): oe_ref, (1, 1): oo_ref}
    bias = b_ref[...].astype(jnp.float32)          # (1, TN); broadcast only at store

    def chunk(t):
        row0 = t * TM
        flat0 = t * chunk_rows
        if not isinstance(t, int):
            row0 = pl.multiple_of(row0, TM)
            flat0 = pl.multiple_of(flat0, chunk_rows)
        first = True
        for kh in range(3):
            for kw in range(3):
                ph = phases[(kh % 2, kw % 2)]
                hs, ws = kh // 2, kw // 2
                patch = ph[0, pl.ds(row0 + hs, TM), ws:ws + Wo, :]   # (TM, Wo, Cin)
                # TODO(synk): replace reshape with a 3D dot_general contracting
                # only Cin once Mosaic lowering is confirmed (avoids relayouts).
                contrib = jnp.dot(patch.reshape(chunk_rows, Cin), w_ref[kh, kw],
                                  preferred_element_type=jnp.float32)
                if first:
                    acc_ref[...] = contrib          # no zero-init pass
                    first = False
                else:
                    acc_ref[...] += contrib
        o_ref[0, pl.ds(flat0, chunk_rows), :] = (acc_ref[...] + bias).astype(o_ref.dtype)

    if n_chunks <= 4:
        for t in range(n_chunks):                   # usually a single full-tile pass
            chunk(t)
    else:
        jax.lax.fori_loop(0, n_chunks, lambda t, _: chunk(t), None)


def _avgpool_down_kernel(ee_ref, eo_ref, oe_ref, oo_ref, o_ref):
    """2x2 stride-2 average pool, f32 accumulation, one (batch, row-tile) step."""
    acc = (ee_ref[...].astype(jnp.float32) + eo_ref[...].astype(jnp.float32)
           + oe_ref[...].astype(jnp.float32) + oo_ref[...].astype(jnp.float32))
    o_ref[...] = (acc * 0.25).astype(o_ref.dtype)


# --------------------------------------------------------------------------- #
# Module wrapper
# --------------------------------------------------------------------------- #
class Downsample:
    """Pallas port of karlo's Downsample (dims=2 only)."""

    def __init__(self, channels, use_conv, dims=2, out_channels=None, key=None,
                 compute_dtype=None):
        assert dims == 2, "only dims=2 is implemented"  # TODO(synk): dims=1/3 variants
        self.channels = channels
        self.out_channels = out_channels or channels
        self.use_conv = use_conv
        # Set compute_dtype=jnp.bfloat16 on v6e/v7x for full MXU rate; None keeps
        # the activation dtype (f32 numerics preserved for the self-test below).
        self.compute_dtype = compute_dtype
        self._policy = _chip_policy()
        if use_conv:
            if key is None:
                key = jax.random.PRNGKey(0)
            kw_, kb_ = jax.random.split(key)
            fan_in = channels * 3 * 3
            bound = 1.0 / float(np.sqrt(fan_in))
            # PyTorch Conv2d default init: U(-1/sqrt(fan_in), 1/sqrt(fan_in))
            self.weight = jax.random.uniform(
                kw_, (self.out_channels, channels, 3, 3), jnp.float32,
                minval=-bound, maxval=bound)                    # OIHW
            self.bias = jax.random.uniform(
                kb_, (self.out_channels,), jnp.float32, minval=-bound, maxval=bound)
        else:
            assert self.channels == self.out_channels
            self.weight = None
            self.bias = None

    def __call__(self, x_nchw):
        assert x_nchw.shape[1] == self.channels
        n, c, h, w = x_nchw.shape
        assert h % 2 == 0 and w % 2 == 0, "even spatial dims expected"
        ho, wo = h // 2, w // 2
        pol = self._policy
        out_dtype = x_nchw.dtype

        if self.use_conv:
            cout = self.out_channels
            tn = _pick_cout_tile(cout, pol["mxu_tn"])
            j_tiles = cout // tn

            cdt = self.compute_dtype or x_nchw.dtype
            act_it = jnp.dtype(cdt).itemsize
            out_it = jnp.dtype(out_dtype).itemsize

            # pad once in NCHW, then one fused reshape+transpose yields the four
            # padded NHWC phases (no intermediate full-NHWC tensor in HBM).
            # TODO(synk): the NCHW<->NHWC wrapper transposes are full HBM passes;
            # keep NHWC through the surrounding model to drop them entirely.
            x_pad = jnp.pad(x_nchw.astype(cdt), ((0, 0), (0, 0), (1, 1), (1, 1)))
            ph = _phase_split_nchw(x_pad)                       # (2,2,N,Ho+1,Wo+1,C)
            ee, eo, oe, oo = ph[0, 0], ph[0, 1], ph[1, 0], ph[1, 1]

            w_k = jnp.transpose(self.weight, (2, 3, 1, 0)).astype(cdt)  # (3,3,Cin,Cout)
            b_k = self.bias.astype(jnp.float32).reshape(1, cout)

            # Grid ordering: keep whichever operand would cost more to re-fetch
            # resident across the inner grid axis.
            #   batch-outer (n, j): phases fetched once, full weights fetched n times
            #   cout-outer  (j, n): full weights fetched once, phases fetched j times
            act_total = n * 4 * (ho + 1) * (wo + 1) * c * act_it
            weight_total = 9 * c * cout * act_it
            weight_resident = (n - 1) * weight_total > (j_tiles - 1) * act_total
            if weight_resident:
                grid = (j_tiles, n)
                phase_map = lambda j, b: (b, 0, 0, 0)
                w_map = lambda j, b: (0, 0, 0, j)
                b_map = lambda j, b: (0, j)
                o_map = lambda j, b: (b, 0, j)
            else:
                grid = (n, j_tiles)
                phase_map = lambda b, j: (b, 0, 0, 0)
                w_map = lambda b, j: (0, 0, 0, j)
                b_map = lambda b, j: (0, j)
                o_map = lambda b, j: (b, 0, j)

            tm = _pick_row_chunk(ho, wo, tn)
            chunk_rows = tm * wo
            phase_spec = pl.BlockSpec((1, ho + 1, wo + 1, c), phase_map)

            # per-step VMEM footprint (inputs/outputs double-buffered + scratch)
            phase_blk = (ho + 1) * (wo + 1) * c * act_it
            block_bytes = (2 * (4 * phase_blk + 9 * c * tn * act_it + 4 * tn)
                           + 2 * ho * wo * tn * out_it
                           + chunk_rows * tn * 4)
            cp_kwargs = {}
            need = block_bytes + (4 << 20)
            if need > pol["default_scoped"]:
                # Raise the scoped limit only when needed, never past ~75% of the
                # chip's physical VMEM (v7x: 48 MiB of 64; v5e/v6e: 96 of 128).
                cp_kwargs["vmem_limit_bytes"] = int(min(need, pol["vmem_cap"]))

            out_flat = pl.pallas_call(
                _conv_down_kernel,
                out_shape=jax.ShapeDtypeStruct((n, ho * wo, cout), out_dtype),
                grid=grid,
                in_specs=[phase_spec, phase_spec, phase_spec, phase_spec,
                          pl.BlockSpec((3, 3, c, tn), w_map),
                          pl.BlockSpec((1, tn), b_map)],
                out_specs=pl.BlockSpec((1, ho * wo, tn), o_map),
                scratch_shapes=[pltpu.VMEM((chunk_rows, tn), jnp.float32)],
                compiler_params=pltpu.CompilerParams(
                    dimension_semantics=("parallel", "parallel"), **cp_kwargs),
            )(ee, eo, oe, oo, w_k, b_k)
            out_nhwc = out_flat.reshape(n, ho, wo, cout)
        else:
            itemsize = jnp.dtype(x_nchw.dtype).itemsize
            ph = _phase_split_nchw(x_nchw)                      # (2,2,N,Ho,Wo,C)
            ee, eo, oe, oo = ph[0, 0], ph[0, 1], ph[1, 0], ph[1, 1]
            # spatial row tiling keeps blocks lane-dense and under the per-chip
            # per-buffer budget (stays within v5e's 16 MiB scoped VMEM default)
            row_cap = max(1, pol["pool_buf_budget"] // max(1, wo * c * itemsize))
            th = _largest_divisor_leq(ho, row_cap)
            phase_spec = pl.BlockSpec((1, th, wo, c), lambda b, t: (b, t, 0, 0))
            out_nhwc = pl.pallas_call(
                _avgpool_down_kernel,
                out_shape=jax.ShapeDtypeStruct((n, ho, wo, c), out_dtype),
                grid=(n, ho // th),
                in_specs=[phase_spec, phase_spec, phase_spec, phase_spec],
                out_specs=pl.BlockSpec((1, th, wo, c), lambda b, t: (b, t, 0, 0)),
                compiler_params=pltpu.CompilerParams(
                    dimension_semantics=("parallel", "parallel")),
            )(ee, eo, oe, oo)

        return jnp.transpose(out_nhwc, (0, 3, 1, 2))            # NHWC -> NCHW


# --------------------------------------------------------------------------- #
# Pure-JAX references (for correctness check)
# --------------------------------------------------------------------------- #
def _conv_ref(x_nchw, w_oihw, b):
    y = jax.lax.conv_general_dilated(
        x_nchw, w_oihw, window_strides=(2, 2), padding=((1, 1), (1, 1)),
        dimension_numbers=("NCHW", "OIHW", "NCHW"))
    return y + b[None, :, None, None]


def _avgpool_ref(x_nchw):
    n, c, h, w = x_nchw.shape
    return x_nchw.reshape(n, c, h // 2, 2, w // 2, 2).mean(axis=(3, 5))


# --------------------------------------------------------------------------- #
if __name__ == "__main__":
    key = jax.random.PRNGKey(0)
    kx, kp = jax.random.split(key)
    x = jax.random.normal(kx, (2, 4, 16, 16), jnp.float32)      # NCHW

    # use_conv=True path (3x3 stride-2 conv)
    ds_conv = Downsample(channels=4, use_conv=True, dims=2, out_channels=4, key=kp)
    y_conv = jax.block_until_ready(ds_conv(x))
    y_conv_ref = _conv_ref(x, ds_conv.weight, ds_conv.bias)
    np.testing.assert_allclose(np.asarray(y_conv), np.asarray(y_conv_ref),
                               rtol=1e-5, atol=1e-5)

    # use_conv=False path (2x2 avg pool)
    ds_pool = Downsample(channels=4, use_conv=False, dims=2)
    y_pool = jax.block_until_ready(ds_pool(x))
    np.testing.assert_allclose(np.asarray(y_pool), np.asarray(_avgpool_ref(x)),
                               rtol=1e-5, atol=1e-5)

    assert y_conv.shape == (2, 4, 8, 8)
    assert y_pool.shape == (2, 4, 8, 8)
    print("KERNEL_OK")
</pallas_src>

<mosaic_0001>
module attributes {stable_mosaic.version = 11 : i64} {
  func.func @_conv_down_kernel(%arg0: i32, %arg1: i32, %arg2: memref<1x9x9x4xf32, #tpu.memory_space<vmem>>, %arg3: memref<1x9x9x4xf32, #tpu.memory_space<vmem>>, %arg4: memref<1x9x9x4xf32, #tpu.memory_space<vmem>>, %arg5: memref<1x9x9x4xf32, #tpu.memory_space<vmem>>, %arg6: memref<3x3x4x4xf32, #tpu.memory_space<vmem>>, %arg7: memref<1x4xf32, #tpu.memory_space<vmem>>, %arg8: memref<1x64x4xf32, #tpu.memory_space<vmem>>, %arg9: memref<64x4xf32, #tpu.memory_space<vmem>>) attributes {dimension_semantics = [#tpu.dimension_semantics<parallel>, #tpu.dimension_semantics<parallel>], iteration_bounds = array<i64: 1, 2>, scalar_prefetch = 0 : i64, scratch_operands = 1 : i64, tpu.core_type = #tpu.core_type<tc>, window_params = [{transform_indices = @transform_0, window_bounds = array<i64: 1, 9, 9, 4>}, {transform_indices = @transform_1, window_bounds = array<i64: 1, 9, 9, 4>}, {transform_indices = @transform_2, window_bounds = array<i64: 1, 9, 9, 4>}, {transform_indices = @transform_3, window_bounds = array<i64: 1, 9, 9, 4>}, {transform_indices = @transform_4, window_bounds = array<i64: 3, 3, 4, 4>}, {transform_indices = @transform_5, window_bounds = array<i64: 1, 4>}, {transform_indices = @transform_6, window_bounds = array<i64: 1, 64, 4>}]} {
    %c0 = arith.constant 0 : index
    %c0_0 = arith.constant 0 : index
    %0 = vector.load %arg7[%c0, %c0_0] : memref<1x4xf32, #tpu.memory_space<vmem>>, vector<1x4xf32>
    %c0_1 = arith.constant 0 : index
    %c0_2 = arith.constant 0 : index
    %c0_3 = arith.constant 0 : index
    %c0_4 = arith.constant 0 : index
    %1 = vector.load %arg2[%c0_1, %c0_2, %c0_3, %c0_4] : memref<1x9x9x4xf32, #tpu.memory_space<vmem>>, vector<1x8x8x4xf32>
    %2 = vector.shape_cast %1 : vector<1x8x8x4xf32> to vector<8x8x4xf32>
    %3 = vector.shape_cast %2 : vector<8x8x4xf32> to vector<64x4xf32>
    %c0_5 = arith.constant 0 : index
    %c0_6 = arith.constant 0 : index
    %c0_7 = arith.constant 0 : index
    %c0_8 = arith.constant 0 : index
    %4 = vector.load %arg6[%c0_5, %c0_6, %c0_7, %c0_8] : memref<3x3x4x4xf32, #tpu.memory_space<vmem>>, vector<1x1x4x4xf32>
    %5 = vector.shape_cast %4 : vector<1x1x4x4xf32> to vector<4x4xf32>
    %cst = arith.constant dense<0.000000e+00> : vector<64x4xf32>
    %6 = tpu.matmul %3, %5, %cst {dimension_numbers = #tpu.dot_dimension_numbers<[1], [0], [0], [1], [0, 0, 1, 1], [], []>} : vector<64x4xf32>, vector<4x4xf32>, vector<64x4xf32> -> vector<64x4xf32>
    %c0_9 = arith.constant 0 : index
    %c0_10 = arith.constant 0 : index
    %7 = vector.load %arg9[%c0_9, %c0_10] : memref<64x4xf32, #tpu.memory_space<vmem>>, vector<64x4xf32>
    tpu.vector_store %arg9[%c0_9, %c0_10], %6 {strides = array<i32>} : memref<64x4xf32, #tpu.memory_space<vmem>>, vector<64x4xf32>,
    %c0_11 = arith.constant 0 : index
    %c0_12 = arith.constant 0 : index
    %c0_13 = arith.constant 0 : index
    %c0_14 = arith.constant 0 : index
    %8 = vector.load %arg3[%c0_11, %c0_12, %c0_13, %c0_14] : memref<1x9x9x4xf32, #tpu.memory_space<vmem>>, vector<1x8x8x4xf32>
    %9 = vector.shape_cast %8 : vector<1x8x8x4xf32> to vector<8x8x4xf32>
    %10 = vector.shape_cast %9 : vector<8x8x4xf32> to vector<64x4xf32>
    %c0_15 = arith.constant 0 : index
    %c1 = arith.constant 1 : index
    %c0_16 = arith.constant 0 : index
    %c0_17 = arith.constant 0 : index
    %11 = vector.load %arg6[%c0_15, %c1, %c0_16, %c0_17] : memref<3x3x4x4xf32, #tpu.memory_space<vmem>>, vector<1x1x4x4xf32>
    %12 = vector.shape_cast %11 : vector<1x1x4x4xf32> to vector<4x4xf32>
    %cst_18 = arith.constant dense<0.000000e+00> : vector<64x4xf32>
    %13 = tpu.matmul %10, %12, %cst_18 {dimension_numbers = #tpu.dot_dimension_numbers<[1], [0], [0], [1], [0, 0, 1, 1], [], []>} : vector<64x4xf32>, vector<4x4xf32>, vector<64x4xf32> -> vector<64x4xf32>
    %c0_19 = arith.constant 0 : index
    %c0_20 = arith.constant 0 : index
    %14 = vector.load %arg9[%c0_19, %c0_20] : memref<64x4xf32, #tpu.memory_space<vmem>>, vector<64x4xf32>
    %15 = arith.addf %14, %13 : vector<64x4xf32>
    %c0_21 = arith.constant 0 : index
    %c0_22 = arith.constant 0 : index
    %16 = vector.load %arg9[%c0_21, %c0_22] : memref<64x4xf32, #tpu.memory_space<vmem>>, vector<64x4xf32>
    tpu.vector_store %arg9[%c0_21, %c0_22], %15 {strides = array<i32>} : memref<64x4xf32, #tpu.memory_space<vmem>>, vector<64x4xf32>,
    %c0_23 = arith.constant 0 : index
    %c0_24 = arith.constant 0 : index
    %c1_25 = arith.constant 1 : index
    %c0_26 = arith.constant 0 : index
    %17 = vector.load %arg2[%c0_23, %c0_24, %c1_25, %c0_26] : memref<1x9x9x4xf32, #tpu.memory_space<vmem>>, vector<1x8x8x4xf32>
    %18 = vector.shape_cast %17 : vector<1x8x8x4xf32> to vector<8x8x4xf32>
    %19 = vector.shape_cast %18 : vector<8x8x4xf32> to vector<64x4xf32>
    %c0_27 = arith.constant 0 : index
    %c2 = arith.constant 2 : index
    %c0_28 = arith.constant 0 : index
    %c0_29 = arith.constant 0 : index
    %20 = vector.load %arg6[%c0_27, %c2, %c0_28, %c0_29] : memref<3x3x4x4xf32, #tpu.memory_space<vmem>>, vector<1x1x4x4xf32>
    %21 = vector.shape_cast %20 : vector<1x1x4x4xf32> to vector<4x4xf32>
    %cst_30 = arith.constant dense<0.000000e+00> : vector<64x4xf32>
    %22 = tpu.matmul %19, %21, %cst_30 {dimension_numbers = #tpu.dot_dimension_numbers<[1], [0], [0], [1], [0, 0, 1, 1], [], []>} : vector<64x4xf32>, vector<4x4xf32>, vector<64x4xf32> -> vector<64x4xf32>
    %c0_31 = arith.constant 0 : index
    %c0_32 = arith.constant 0 : index
    %23 = vector.load %arg9[%c0_31, %c0_32] : memref<64x4xf32, #tpu.memory_space<vmem>>, vector<64x4xf32>
    %24 = arith.addf %23, %22 : vector<64x4xf32>
    %c0_33 = arith.constant 0 : index
    %c0_34 = arith.constant 0 : index
    %25 = vector.load %arg9[%c0_33, %c0_34] : memref<64x4xf32, #tpu.memory_space<vmem>>, vector<64x4xf32>
    tpu.vector_store %arg9[%c0_33, %c0_34], %24 {strides = array<i32>} : memref<64x4xf32, #tpu.memory_space<vmem>>, vector<64x4xf32>,
    %c0_35 = arith.constant 0 : index
    %c0_36 = arith.constant 0 : index
    %c0_37 = arith.constant 0 : index
    %c0_38 = arith.constant 0 : index
    %26 = vector.load %arg4[%c0_35, %c0_36, %c0_37, %c0_38] : memref<1x9x9x4xf32, #tpu.memory_space<vmem>>, vector<1x8x8x4xf32>
    %27 = vector.shape_cast %26 : vector<1x8x8x4xf32> to vector<8x8x4xf32>
    %28 = vector.shape_cast %27 : vector<8x8x4xf32> to vector<64x4xf32>
    %c1_39 = arith.constant 1 : index
    %c0_40 = arith.constant 0 : index
    %c0_41 = arith.constant 0 : index
    %c0_42 = arith.constant 0 : index
    %29 = vector.load %arg6[%c1_39, %c0_40, %c0_41, %c0_42] : memref<3x3x4x4xf32, #tpu.memory_space<vmem>>, vector<1x1x4x4xf32>
    %30 = vector.shape_cast %29 : vector<1x1x4x4xf32> to vector<4x4xf32>
    %cst_43 = arith.constant dense<0.000000e+00> : vector<64x4xf32>
    %31 = tpu.matmul %28, %30, %cst_43 {dimension_numbers = #tpu.dot_dimension_numbers<[1], [0], [0], [1], [0, 0, 1, 1], [], []>} : vector<64x4xf32>, vector<4x4xf32>, vector<64x4xf32> -> vector<64x4xf32>
    %c0_44 = arith.constant 0 : index
    %c0_45 = arith.constant 0 : index
    %32 = vector.load %arg9[%c0_44, %c0_45] : memref<64x4xf32, #tpu.memory_space<vmem>>, vector<64x4xf32>
    %33 = arith.addf %32, %31 : vector<64x4xf32>
    %c0_46 = arith.constant 0 : index
    %c0_47 = arith.constant 0 : index
    %34 = vector.load %arg9[%c0_46, %c0_47] : memref<64x4xf32, #tpu.memory_space<vmem>>, vector<64x4xf32>
    tpu.vector_store %arg9[%c0_46, %c0_47], %33 {strides = array<i32>} : memref<64x4xf32, #tpu.memory_space<vmem>>, vector<64x4xf32>,
    %c0_48 = arith.constant 0 : index
    %c0_49 = arith.constant 0 : index
    %c0_50 = arith.constant 0 : index
    %c0_51 = arith.constant 0 : index
    %35 = vector.load %arg5[%c0_48, %c0_49, %c0_50, %c0_51] : memref<1x9x9x4xf32, #tpu.memory_space<vmem>>, vector<1x8x8x4xf32>
    %36 = vector.shape_cast %35 : vector<1x8x8x4xf32> to vector<8x8x4xf32>
    %37 = vector.shape_cast %36 : vector<8x8x4xf32> to vector<64x4xf32>
    %c1_52 = arith.constant 1 : index
    %c1_53 = arith.constant 1 : index
    %c0_54 = arith.constant 0 : index
    %c0_55 = arith.constant 0 : index
    %38 = vector.load %arg6[%c1_52, %c1_53, %c0_54, %c0_55] : memref<3x3x4x4xf32, #tpu.memory_space<vmem>>, vector<1x1x4x4xf32>
    %39 = vector.shape_cast %38 : vector<1x1x4x4xf32> to vector<4x4xf32>
    %cst_56 = arith.constant dense<0.000000e+00> : vector<64x4xf32>
    %40 = tpu.matmul %37, %39, %cst_56 {dimension_numbers = #tpu.dot_dimension_numbers<[1], [0], [0], [1], [0, 0, 1, 1], [], []>} : vector<64x4xf32>, vector<4x4xf32>, vector<64x4xf32> -> vector<64x4xf32>
    %c0_57 = arith.constant 0 : index
    %c0_58 = arith.constant 0 : index
    %41 = vector.load %arg9[%c0_57, %c0_58] : memref<64x4xf32, #tpu.memory_space<vmem>>, vector<64x4xf32>
    %42 = arith.addf %41, %40 : vector<64x4xf32>
    %c0_59 = arith.constant 0 : index
    %c0_60 = arith.constant 0 : index
    %43 = vector.load %arg9[%c0_59, %c0_60] : memref<64x4xf32, #tpu.memory_space<vmem>>, vector<64x4xf32>
    tpu.vector_store %arg9[%c0_59, %c0_60], %42 {strides = array<i32>} : memref<64x4xf32, #tpu.memory_space<vmem>>, vector<64x4xf32>,
    %c0_61 = arith.constant 0 : index
    %c0_62 = arith.constant 0 : index
    %c1_63 = arith.constant 1 : index
    %c0_64 = arith.constant 0 : index
    %44 = vector.load %arg4[%c0_61, %c0_62, %c1_63, %c0_64] : memref<1x9x9x4xf32, #tpu.memory_space<vmem>>, vector<1x8x8x4xf32>
    %45 = vector.shape_cast %44 : vector<1x8x8x4xf32> to vector<8x8x4xf32>
    %46 = vector.shape_cast %45 : vector<8x8x4xf32> to vector<64x4xf32>
    %c1_65 = arith.constant 1 : index
    %c2_66 = arith.constant 2 : index
    %c0_67 = arith.constant 0 : index
    %c0_68 = arith.constant 0 : index
    %47 = vector.load %arg6[%c1_65, %c2_66, %c0_67, %c0_68] : memref<3x3x4x4xf32, #tpu.memory_space<vmem>>, vector<1x1x4x4xf32>
    %48 = vector.shape_cast %47 : vector<1x1x4x4xf32> to vector<4x4xf32>
    %cst_69 = arith.constant dense<0.000000e+00> : vector<64x4xf32>
    %49 = tpu.matmul %46, %48, %cst_69 {dimension_numbers = #tpu.dot_dimension_numbers<[1], [0], [0], [1], [0, 0, 1, 1], [], []>} : vector<64x4xf32>, vector<4x4xf32>, vector<64x4xf32> -> vector<64x4xf32>
    %c0_70 = arith.constant 0 : index
    %c0_71 = arith.constant 0 : index
    %50 = vector.load %arg9[%c0_70, %c0_71] : memref<64x4xf32, #tpu.memory_space<vmem>>, vector<64x4xf32>
    %51 = arith.addf %50, %49 : vector<64x4xf32>
    %c0_72 = arith.constant 0 : index
    %c0_73 = arith.constant 0 : index
    %52 = vector.load %arg9[%c0_72, %c0_73] : memref<64x4xf32, #tpu.memory_space<vmem>>, vector<64x4xf32>
    tpu.vector_store %arg9[%c0_72, %c0_73], %51 {strides = array<i32>} : memref<64x4xf32, #tpu.memory_space<vmem>>, vector<64x4xf32>,
    %c0_74 = arith.constant 0 : index
    %c1_75 = arith.constant 1 : index
    %c0_76 = arith.constant 0 : index
    %c0_77 = arith.constant 0 : index
    %53 = vector.load %arg2[%c0_74, %c1_75, %c0_76, %c0_77] : memref<1x9x9x4xf32, #tpu.memory_space<vmem>>, vector<1x8x8x4xf32>
    %54 = vector.shape_cast %53 : vector<1x8x8x4xf32> to vector<8x8x4xf32>
    %55 = vector.shape_cast %54 : vector<8x8x4xf32> to vector<64x4xf32>
    %c2_78 = arith.constant 2 : index
    %c0_79 = arith.constant 0 : index
    %c0_80 = arith.constant 0 : index
    %c0_81 = arith.constant 0 : index
    %56 = vector.load %arg6[%c2_78, %c0_79, %c0_80, %c0_81] : memref<3x3x4x4xf32, #tpu.memory_space<vmem>>, vector<1x1x4x4xf32>
    %57 = vector.shape_cast %56 : vector<1x1x4x4xf32> to vector<4x4xf32>
    %cst_82 = arith.constant dense<0.000000e+00> : vector<64x4xf32>
    %58 = tpu.matmul %55, %57, %cst_82 {dimension_numbers = #tpu.dot_dimension_numbers<[1], [0], [0], [1], [0, 0, 1, 1], [], []>} : vector<64x4xf32>, vector<4x4xf32>, vector<64x4xf32> -> vector<64x4xf32>
    %c0_83 = arith.constant 0 : index
    %c0_84 = arith.constant 0 : index
    %59 = vector.load %arg9[%c0_83, %c0_84] : memref<64x4xf32, #tpu.memory_space<vmem>>, vector<64x4xf32>
    %60 = arith.addf %59, %58 : vector<64x4xf32>
    %c0_85 = arith.constant 0 : index
    %c0_86 = arith.constant 0 : index
    %61 = vector.load %arg9[%c0_85, %c0_86] : memref<64x4xf32, #tpu.memory_space<vmem>>, vector<64x4xf32>
    tpu.vector_store %arg9[%c0_85, %c0_86], %60 {strides = array<i32>} : memref<64x4xf32, #tpu.memory_space<vmem>>, vector<64x4xf32>,
    %c0_87 = arith.constant 0 : index
    %c1_88 = arith.constant 1 : index
    %c0_89 = arith.constant 0 : index
    %c0_90 = arith.constant 0 : index
    %62 = vector.load %arg3[%c0_87, %c1_88, %c0_89, %c0_90] : memref<1x9x9x4xf32, #tpu.memory_space<vmem>>, vector<1x8x8x4xf32>
    %63 = vector.shape_cast %62 : vector<1x8x8x4xf32> to vector<8x8x4xf32>
    %64 = vector.shape_cast %63 : vector<8x8x4xf32> to vector<64x4xf32>
    %c2_91 = arith.constant 2 : index
    %c1_92 = arith.constant 1 : index
    %c0_93 = arith.constant 0 : index
    %c0_94 = arith.constant 0 : index
    %65 = vector.load %arg6[%c2_91, %c1_92, %c0_93, %c0_94] : memref<3x3x4x4xf32, #tpu.memory_space<vmem>>, vector<1x1x4x4xf32>
    %66 = vector.shape_cast %65 : vector<1x1x4x4xf32> to vector<4x4xf32>
    %cst_95 = arith.constant dense<0.000000e+00> : vector<64x4xf32>
    %67 = tpu.matmul %64, %66, %cst_95 {dimension_numbers = #tpu.dot_dimension_numbers<[1], [0], [0], [1], [0, 0, 1, 1], [], []>} : vector<64x4xf32>, vector<4x4xf32>, vector<64x4xf32> -> vector<64x4xf32>
    %c0_96 = arith.constant 0 : index
    %c0_97 = arith.constant 0 : index
    %68 = vector.load %arg9[%c0_96, %c0_97] : memref<64x4xf32, #tpu.memory_space<vmem>>, vector<64x4xf32>
    %69 = arith.addf %68, %67 : vector<64x4xf32>
    %c0_98 = arith.constant 0 : index
    %c0_99 = arith.constant 0 : index
    %70 = vector.load %arg9[%c0_98, %c0_99] : memref<64x4xf32, #tpu.memory_space<vmem>>, vector<64x4xf32>
    tpu.vector_store %arg9[%c0_98, %c0_99], %69 {strides = array<i32>} : memref<64x4xf32, #tpu.memory_space<vmem>>, vector<64x4xf32>,
    %c0_100 = arith.constant 0 : index
    %c1_101 = arith.constant 1 : index
    %c1_102 = arith.constant 1 : index
    %c0_103 = arith.constant 0 : index
    %71 = vector.load %arg2[%c0_100, %c1_101, %c1_102, %c0_103] : memref<1x9x9x4xf32, #tpu.memory_space<vmem>>, vector<1x8x8x4xf32>
    %72 = vector.shape_cast %71 : vector<1x8x8x4xf32> to vector<8x8x4xf32>
    %73 = vector.shape_cast %72 : vector<8x8x4xf32> to vector<64x4xf32>
    %c2_104 = arith.constant 2 : index
    %c2_105 = arith.constant 2 : index
    %c0_106 = arith.constant 0 : index
    %c0_107 = arith.constant 0 : index
    %74 = vector.load %arg6[%c2_104, %c2_105, %c0_106, %c0_107] : memref<3x3x4x4xf32, #tpu.memory_space<vmem>>, vector<1x1x4x4xf32>
    %75 = vector.shape_cast %74 : vector<1x1x4x4xf32> to vector<4x4xf32>
    %cst_108 = arith.constant dense<0.000000e+00> : vector<64x4xf32>
    %76 = tpu.matmul %73, %75, %cst_108 {dimension_numbers = #tpu.dot_dimension_numbers<[1], [0], [0], [1], [0, 0, 1, 1], [], []>} : vector<64x4xf32>, vector<4x4xf32>, vector<64x4xf32> -> vector<64x4xf32>
    %c0_109 = arith.constant 0 : index
    %c0_110 = arith.constant 0 : index
    %77 = vector.load %arg9[%c0_109, %c0_110] : memref<64x4xf32, #tpu.memory_space<vmem>>, vector<64x4xf32>
    %78 = arith.addf %77, %76 : vector<64x4xf32>
    %c0_111 = arith.constant 0 : index
    %c0_112 = arith.constant 0 : index
    %79 = vector.load %arg9[%c0_111, %c0_112] : memref<64x4xf32, #tpu.memory_space<vmem>>, vector<64x4xf32>
    tpu.vector_store %arg9[%c0_111, %c0_112], %78 {strides = array<i32>} : memref<64x4xf32, #tpu.memory_space<vmem>>, vector<64x4xf32>,
    %c0_113 = arith.constant 0 : index
    %c0_114 = arith.constant 0 : index
    %80 = vector.load %arg9[%c0_113, %c0_114] : memref<64x4xf32, #tpu.memory_space<vmem>>, vector<64x4xf32>
    %81 = vector.broadcast %0 : vector<1x4xf32> to vector<64x4xf32>
    %82 = arith.addf %80, %81 : vector<64x4xf32>
    %c0_115 = arith.constant 0 : index
    %c0_116 = arith.constant 0 : index
    %c0_117 = arith.constant 0 : index
    %83 = vector.load %arg8[%c0_115, %c0_116, %c0_117] : memref<1x64x4xf32, #tpu.memory_space<vmem>>, vector<1x64x4xf32>
    %84 = vector.shape_cast %83 : vector<1x64x4xf32> to vector<64x4xf32>
    %85 = vector.shape_cast %82 : vector<64x4xf32> to vector<1x64x4xf32>
    tpu.vector_store %arg8[%c0_115, %c0_116, %c0_117], %85 {strides = array<i32>} : memref<1x64x4xf32, #tpu.memory_space<vmem>>, vector<1x64x4xf32>,
    return
  }
  func.func @transform_0(%arg0: i32, %arg1: i32) -> (i32, i32, i32, i32) {
    %c0_i32 = arith.constant 0 : i32
    %c0_i32_0 = arith.constant 0 : i32
    %c0_i32_1 = arith.constant 0 : i32
    %c0_i32_2 = arith.constant 0 : i32
    return %arg1, %c0_i32, %c0_i32_0, %c0_i32_1 : i32, i32, i32, i32
  }
  func.func @transform_1(%arg0: i32, %arg1: i32) -> (i32, i32, i32, i32) {
    %c0_i32 = arith.constant 0 : i32
    %c0_i32_0 = arith.constant 0 : i32
    %c0_i32_1 = arith.constant 0 : i32
    %c0_i32_2 = arith.constant 0 : i32
    return %arg1, %c0_i32, %c0_i32_0, %c0_i32_1 : i32, i32, i32, i32
  }
  func.func @transform_2(%arg0: i32, %arg1: i32) -> (i32, i32, i32, i32) {
    %c0_i32 = arith.constant 0 : i32
    %c0_i32_0 = arith.constant 0 : i32
    %c0_i32_1 = arith.constant 0 : i32
    %c0_i32_2 = arith.constant 0 : i32
    return %arg1, %c0_i32, %c0_i32_0, %c0_i32_1 : i32, i32, i32, i32
  }
  func.func @transform_3(%arg0: i32, %arg1: i32) -> (i32, i32, i32, i32) {
    %c0_i32 = arith.constant 0 : i32
    %c0_i32_0 = arith.constant 0 : i32
    %c0_i32_1 = arith.constant 0 : i32
    %c0_i32_2 = arith.constant 0 : i32
    return %arg1, %c0_i32, %c0_i32_0, %c0_i32_1 : i32, i32, i32, i32
  }
  func.func @transform_4(%arg0: i32, %arg1: i32) -> (i32, i32, i32, i32) {
    %c0_i32 = arith.constant 0 : i32
    %c0_i32_0 = arith.constant 0 : i32
    %c0_i32_1 = arith.constant 0 : i32
    %c0_i32_2 = arith.constant 0 : i32
    return %c0_i32, %c0_i32_0, %c0_i32_1, %arg0 : i32, i32, i32, i32
  }
  func.func @transform_5(%arg0: i32, %arg1: i32) -> (i32, i32) {
    %c0_i32 = arith.constant 0 : i32
    %c0_i32_0 = arith.constant 0 : i32
    return %c0_i32, %arg0 : i32, i32
  }
  func.func @transform_6(%arg0: i32, %arg1: i32) -> (i32, i32, i32) {
    %c0_i32 = arith.constant 0 : i32
    %c0_i32_0 = arith.constant 0 : i32
    return %arg1, %c0_i32, %arg0 : i32, i32, i32
  }
}

</mosaic_0001>

<bundles_post_ra>
// kernel: tpu_custom_call.1
= control target key start
LH: loop header
LB: loop body
LE: loop exit
PB: predicated region body
PF: predicated region fallthrough
CT: control target
= control target key end

     0   :  { %s2439_s21 = smov 0   ;;  %s2441_s22 = smov 0   ;;  %s2867_s0 = inlined_call_operand.vmem [shape: f32[2,9,9,4], index: 0, kind: input, shape index: {}]   ;;  %s2868_s1 = inlined_call_operand.vmem [shape: f32[2,9,9,4], index: 1, kind: input, shape index: {}]   ;;  %s2869_s2 = inlined_call_operand.vmem [shape: f32[2,9,9,4], index: 2, kind: input, shape index: {}]   ;;  %s2870_s3 = inlined_call_operand.vmem [shape: f32[2,9,9,4], index: 3, kind: input, shape index: {}]   ;;  %s2871_s4 = inlined_call_operand.vmem [shape: f32[3,3,4,4], index: 4, kind: input, shape index: {}]   ;;  %s2872_s5 = inlined_call_operand.vmem [shape: f32[1,4], index: 5, kind: input, shape index: {}]   ;;  %s2873_s6 = inlined_call_operand.vmem [shape: f32[2,64,4], index: 6, kind: output, shape index: {}]  }
   0x1   :  { %s2443_s23 = smov 0  }
   0x2 LB: > { %s25_s24 = sadd.s32 1, %s2398_s22  ;;  %p2022_p0 = scmp.ge.s32.totalorder %s2402_s23, 1  ;;  %s2402_s23 = sphi %s2443_s23, %s16_s23   ;;  %s2398_s22 = sphi %s2441_s22, %s2875_s22   ;;  %s2394_s21 = sphi %s2439_s21, %s2874_s21  }
   0x3   : > { %p26_p1 = scmp.ge.s32.totalorder %s25_s24, 2  ;;  %p273_p2 = scmp.lt.s32.totalorder %s2402_s23, 3 }
   0x5   : > { %s2877_s24 = smov (%p26_p1, %s25_s24), 0  ;;  %p274_p3 = pnand %p2022_p0, %p273_p2 }
   0x6   : > { %v372_v0 = vld [vmem:[%s2871_s4] sm:$0xf] (!%p274_p3)  ;;  %vm398_vm0 = vcmask (!%p274_p3), 1043456   ;;  %p328_p4 = scmp.lt.s32.totalorder (!%p274_p3), %s2394_s21, 1  ;;  %v2038_v1 = vld [vmem:[%s2871_s4 + $0x4] sm:$0xf] (!%p274_p3) }
   0x7   : > { %277 = sbr.rel (%p274_p3) target bundleno = 337 (0x151), region = 44  ;;  %2353 = vmatprep.subr.msk.mxu1 (!%p274_p3), %vm398_vm0, %v372_v0  ;;  %2227 = vmatprep.subr.msk.mxu0 (!%p274_p3), %vm398_vm0, %v372_v0  ;;  %v2048_v2 = vld [vmem:[%s2871_s4 + $0x8] sm:$0xf] (!%p274_p3)  ;;  %vm373_vm1 = vcmask (!%p274_p3), 31744   ;;  %v2058_v9 = vld [vmem:[%s2871_s4 + $0xc] sm:$0xf] (!%p274_p3) }
   0x8   : > { %2354 = vmatpush3.msk.msra.mxu1 (!%p274_p3), %vm398_vm0, %v372_v0  ;;  %2228 = vmatpush3.msk.msra.mxu0 (!%p274_p3), %vm398_vm0, %v372_v0  ;;  %v2068_v10 = vld [vmem:[%s2871_s4 + $0x10] sm:$0xf] (!%p274_p3)  ;;  %v2078_v19 = vld [vmem:[%s2871_s4 + $0x14] sm:$0xf] (!%p274_p3)  ;;  %v2096_v20 = vld [vmem:[%s2871_s4 + $0x18] sm:$0xf] (!%p274_p3) }
   0x9   : > { %2241 = vmatprep.subr.msk.mxu1 (!%p274_p3), %vm398_vm0, %v2038_v1  ;;  %2255 = vmatprep.subr.msk.mxu0 (!%p274_p3), %vm398_vm0, %v2048_v2  ;;  %v2114_v37 = vld [vmem:[%s2871_s4 + $0x1c] sm:$0xf] (!%p274_p3)  ;;  %v2132_v38 = vld [vmem:[%s2871_s4 + $0x20] sm:$0xf] (!%p274_p3) }
   0xe   : > { %s2879_s21 = smov (!%p328_p4, %s2394_s21), 1 }
   0xf   : > { %s2475_s7 = smul.u32 144, %s2879_s21 }
  0x11   : > { %s2481_s10 = scalar_lea.vmem %s2867_s0, %s2475_s7  ;;  %s2506_s13 = scalar_lea.vmem %s2868_s1, %s2475_s7 }
  0x12   : > { %v364_v3 = vld [vmem:[%s2481_s10] sm:$0xff]  ;;  %v2488_v5 = vld [vmem:[%s2481_s10 + $0x10] sm:$0xff]  ;;  %s2606_s28 = scalar_lea.vmem %s2869_s2, %s2475_s7  ;;  %s2612_s8 = scalar_lea.vmem %s2870_s3, %s2475_s7 }
  0x13   : > { %v2485_v4 = vld [vmem:[%s2481_s10 + $0x40] sm:$0xff]  ;;  %2229 = vmatprep.mubr.msk.f32.mxu0 %vm373_vm1, %v364_v3  ;;  %v2494_v6 = vld [vmem:[%s2481_s10 + $0x50] sm:$0xff] }
  0x14   : > { %2235 = vmatprep.mubr.msk.f32.mxu1 %vm373_vm1, %v2485_v4  ;;  %v2497_v7 = vld [vmem:[%s2481_s10 + $0x20] sm:$0xff]  ;;  %2230 = vmatmul.mubr.msk.f32.vlgmr.msra.gmra.mrb[0].mxu0 %vm373_vm1, %v2488_v5  ;;  %v2522_v11 = vld [vmem:[%s2481_s10 + $0x30] sm:$0xff] }
  0x15   : > { %v2500_v8 = vld [vmem:[%s2481_s10 + $0x60] sm:$0xff]  ;;  %2236 = vmatmul.mubr.msk.f32.vlgmr.msra.gmra.mrb[0].mxu1 %vm373_vm1, %v2494_v6  ;;  %2232 = vmatprep.mubr.msk.f32.mxu0 %vm373_vm1, %v2497_v7  ;;  %v2525_v12 = vld [vmem:[%s2481_s10 + $0x70] sm:$0xff] }
  0x16   : > { %2242 = vmatpush3.msk.msra.mxu1 %vm398_vm0, %v2038_v1  ;;  %2238 = vmatprep.mubr.msk.f32.mxu1 %vm373_vm1, %v2500_v8  ;;  %v515_v13 = vld [vmem:[%s2506_s13] sm:$0xff]  ;;  %v2540_v15 = vld [vmem:[%s2506_s13 + $0x10] sm:$0xff] }
  0x17   : > { %2256 = vmatpush3.msk.msra.mxu0 %vm398_vm0, %v2048_v2  ;;  %v681_v14 = vld [vmem:[%s2481_s10 + $0x1] sm:$0xff]  ;;  %2269 = vmatprep.subr.msk.mxu1 %vm398_vm0, %v2058_v9  ;;  %v2544_v16 = vld [vmem:[%s2481_s10 + $0x11] sm:$0xff] }
  0x18   : > { %2283 = vmatprep.subr.msk.mxu0 %vm398_vm0, %v2068_v10  ;;  %2233 = vmatmul.mubr.msk.f32.gmra.mrb[2].mxu0 %vm373_vm1, %v2522_v11  ;;  %v2547_v17 = vld [vmem:[%s2506_s13 + $0x20] sm:$0xff]  ;;  %v2565_v21 = vld [vmem:[%s2506_s13 + $0x30] sm:$0xff] }
  0x19   : > { %2239 = vmatmul.mubr.msk.f32.gmra.mrb[2].mxu1 %vm373_vm1, %v2525_v12  ;;  %2257 = vmatprep.mubr.msk.f32.mxu0 %vm373_vm1, %v681_v14  ;;  %v2550_v18 = vld [vmem:[%s2481_s10 + $0x21] sm:$0xff]  ;;  %v2569_v22 = vld [vmem:[%s2481_s10 + $0x31] sm:$0xff] }
  0x1a   : > { %2243 = vmatprep.mubr.msk.f32.mxu1 %vm373_vm1, %v515_v13  ;;  %v2572_v23 = vld [vmem:[%s2506_s13 + $0x40] sm:$0xff]  ;;  %v2589_v25 = vld [vmem:[%s2506_s13 + $0x50] sm:$0xff] }
  0x1b   : > { %v2578_v24 = vld [vmem:[%s2481_s10 + $0x41] sm:$0xff]  ;;  %v2594_v26 = vld [vmem:[%s2481_s10 + $0x51] sm:$0xff] }
  0x1c   : > { %2258 = vmatmul.mubr.msk.f32.vlgmr.msra.gmra.mrb[4].mxu0 %vm373_vm1, %v2544_v16  ;;  %v2597_v27 = vld [vmem:[%s2506_s13 + $0x60] sm:$0xff]  ;;  %v2621_v29 = vld [vmem:[%s2506_s13 + $0x70] sm:$0xff] }
  0x1d   : > { %2244 = vmatmul.mubr.msk.f32.vlgmr.msra.gmra.mrb[4].mxu1 %vm373_vm1, %v2540_v15  ;;  %2260 = vmatprep.mubr.msk.f32.mxu0 %vm373_vm1, %v2550_v18  ;;  %v2600_v28 = vld [vmem:[%s2481_s10 + $0x61] sm:$0xff]  ;;  %v2626_v30 = vld [vmem:[%s2481_s10 + $0x71] sm:$0xff] }
  0x1e   : > { %2246 = vmatprep.mubr.msk.f32.mxu1 %vm373_vm1, %v2547_v17  ;;  %2270 = vmatpush3.msk.msra.mxu1 %vm398_vm0, %v2058_v9  ;;  %v847_v31 = vld [vmem:[%s2606_s28] sm:$0xff]  ;;  %v848_v33 = vld [vmem:[%s2606_s28 + $0x10] sm:$0xff] }
  0x1f   : > { %2284 = vmatpush3.msk.msra.mxu0 %vm398_vm0, %v2068_v10  ;;  %2297 = vmatprep.subr.msk.mxu1 %vm398_vm0, %v2078_v19  ;;  %v1013_v32 = vld [vmem:[%s2612_s8] sm:$0xff]  ;;  %v1014_v34 = vld [vmem:[%s2612_s8 + $0x10] sm:$0xff] }
  0x20   : > { %2311 = vmatprep.subr.msk.mxu0 %vm398_vm0, %v2096_v20  ;;  %2261 = vmatmul.mubr.msk.f32.gmra.mrb[6].mxu0 %vm373_vm1, %v2569_v22  ;;  %v849_v35 = vld [vmem:[%s2606_s28 + $0x20] sm:$0xff]  ;;  %v850_v39 = vld [vmem:[%s2606_s28 + $0x30] sm:$0xff] }
  0x21   : > { %2247 = vmatmul.mubr.msk.f32.gmra.mrb[6].mxu1 %vm373_vm1, %v2565_v21  ;;  %2263 = vmatprep.mubr.msk.f32.mxu0 %vm373_vm1, %v2578_v24  ;;  %v1015_v36 = vld [vmem:[%s2612_s8 + $0x20] sm:$0xff]  ;;  %v1016_v40 = vld [vmem:[%s2612_s8 + $0x30] sm:$0xff] }
  0x22   : > { %2249 = vmatprep.mubr.msk.f32.mxu1 %vm373_vm1, %v2572_v23  ;;  %v851_v41 = vld [vmem:[%s2606_s28 + $0x40] sm:$0xff]  ;;  %v852_v43 = vld [vmem:[%s2606_s28 + $0x50] sm:$0xff] }
  0x23   : > { %v1017_v42 = vld [vmem:[%s2612_s8 + $0x40] sm:$0xff]  ;;  %v1018_v44 = vld [vmem:[%s2612_s8 + $0x50] sm:$0xff] }
  0x24   : > { %2264 = vmatmul.mubr.msk.f32.gmra.mrb[8].mxu0 %vm373_vm1, %v2594_v26  ;;  %v853_v45 = vld [vmem:[%s2606_s28 + $0x60] sm:$0xff]  ;;  %v854_v47 = vld [vmem:[%s2606_s28 + $0x70] sm:$0xff] }
  0x25   : > { %2250 = vmatmul.mubr.msk.f32.gmra.mrb[8].mxu1 %vm373_vm1, %v2589_v25  ;;  %2266 = vmatprep.mubr.msk.f32.mxu0 %vm373_vm1, %v2600_v28  ;;  %v1019_v46 = vld [vmem:[%s2612_s8 + $0x60] sm:$0xff]  ;;  %v1020_v48 = vld [vmem:[%s2612_s8 + $0x70] sm:$0xff] }
  0x26   : > { %2252 = vmatprep.mubr.msk.f32.mxu1 %vm373_vm1, %v2597_v27  ;;  %v1179_v49 = vld [vmem:[%s2606_s28 + $0x1] sm:$0xff]  ;;  %v1180_v50 = vld [vmem:[%s2606_s28 + $0x11] sm:$0xff] }
  0x27   : > { %v1181_v51 = vld [vmem:[%s2606_s28 + $0x21] sm:$0xff]  ;;  %v1182_v52 = vld [vmem:[%s2606_s28 + $0x31] sm:$0xff] }
  0x28   : > { %2267 = vmatmul.mubr.msk.f32.gmra.mrb[10].mxu0 %vm373_vm1, %v2626_v30  ;;  %v1183_v53 = vld [vmem:[%s2606_s28 + $0x41] sm:$0xff]  ;;  %v1184_v54 = vld [vmem:[%s2606_s28 + $0x51] sm:$0xff] }
  0x29   : > { %2253 = vmatmul.mubr.msk.f32.gmra.mrb[10].mxu1 %vm373_vm1, %v2621_v29  ;;  %2285 = vmatprep.mubr.msk.f32.mxu0 %vm373_vm1, %v1013_v32  ;;  %v1185_v55 = vld [vmem:[%s2606_s28 + $0x61] sm:$0xff]  ;;  %v1186_v56 = vld [vmem:[%s2606_s28 + $0x71] sm:$0xff] }
  0x2a   : > { %2271 = vmatprep.mubr.msk.f32.mxu1 %vm373_vm1, %v847_v31  ;;  %v2095_v57 = vld [vmem:[%s2481_s10 + $0x80] sm:$0xff] }
  0x2b   : > { %v2113_v58 = vld [vmem:[%s2506_s13 + $0x80] sm:$0xff] }
  0x2c   : > { %2286 = vmatmul.mubr.msk.f32.vlgmr.msra.gmra.mrb[12].mxu0 %vm373_vm1, %v1014_v34  ;;  %v2131_v59 = vld [vmem:[%s2481_s10 + $0x81] sm:$0xff]  ;;  %s2145_s10 = sshll.u32 %s2879_s21, 6 }
  0x2d   : > { %2272 = vmatmul.mubr.msk.f32.vlgmr.msra.gmra.mrb[12].mxu1 %vm373_vm1, %v848_v33  ;;  %2288 = vmatprep.mubr.msk.f32.mxu0 %vm373_vm1, %v1015_v36  ;;  %s2836_s17 = scalar_lea.vmem %s2873_s6, %s2145_s10 }
  0x2e   : > { %2274 = vmatprep.mubr.msk.f32.mxu1 %vm373_vm1, %v849_v35  ;;  %2298 = vmatpush3.msk.msra.mxu1 %vm398_vm0, %v2078_v19 }
  0x2f   : > { %2312 = vmatpush3.msk.msra.mxu0 %vm398_vm0, %v2096_v20  ;;  %2325 = vmatprep.subr.msk.mxu1 %vm398_vm0, %v2114_v37 }
  0x30   : > { %2339 = vmatprep.subr.msk.mxu0 %vm398_vm0, %v2132_v38  ;;  %2289 = vmatmul.mubr.msk.f32.gmra.mrb[14].mxu0 %vm373_vm1, %v1016_v40 }
  0x31   : > { %2275 = vmatmul.mubr.msk.f32.gmra.mrb[14].mxu1 %vm373_vm1, %v850_v39  ;;  %2291 = vmatprep.mubr.msk.f32.mxu0 %vm373_vm1, %v1017_v42 }
  0x32   : > { %2277 = vmatprep.mubr.msk.f32.mxu1 %vm373_vm1, %v851_v41 }
  0x34   : > { %2292 = vmatmul.mubr.msk.f32.gmra.mrb[16].mxu0 %vm373_vm1, %v1018_v44 }
  0x35   : > { %2278 = vmatmul.mubr.msk.f32.gmra.mrb[16].mxu1 %vm373_vm1, %v852_v43  ;;  %2294 = vmatprep.mubr.msk.f32.mxu0 %vm373_vm1, %v1019_v46 }
  0x36   : > { %2280 = vmatprep.mubr.msk.f32.mxu1 %vm373_vm1, %v853_v45 }
  0x38   : > { %2295 = vmatmul.mubr.msk.f32.gmra.mrb[18].mxu0 %vm373_vm1, %v1020_v48 }
  0x39   : > { %2281 = vmatmul.mubr.msk.f32.gmra.mrb[18].mxu1 %vm373_vm1, %v854_v47  ;;  %2313 = vmatprep.mubr.msk.f32.mxu0 %vm373_vm1, %v2488_v5 }
  0x3a   : > { %2299 = vmatprep.mubr.msk.f32.mxu1 %vm373_vm1, %v1179_v49 }
  0x3c   : > { %2314 = vmatmul.mubr.msk.f32.vlgmr.msra.gmra.mrb[20].mxu0 %vm373_vm1, %v2497_v7 }
  0x3d   : > { %2300 = vmatmul.mubr.msk.f32.vlgmr.msra.gmra.mrb[20].mxu1 %vm373_vm1, %v1180_v50  ;;  %2316 = vmatprep.mubr.msk.f32.mxu0 %vm373_vm1, %v2522_v11 }
  0x3e   : > { %2302 = vmatprep.mubr.msk.f32.mxu1 %vm373_vm1, %v1181_v51  ;;  %2326 = vmatpush3.msk.msra.mxu1 %vm398_vm0, %v2114_v37 }
  0x3f   : > { %2340 = vmatpush3.msk.msra.mxu0 %vm398_vm0, %v2132_v38 }
  0x40   : > { %2317 = vmatmul.mubr.msk.f32.gmra.mrb[22].mxu0 %vm373_vm1, %v2485_v4 }
  0x41   : > { %2303 = vmatmul.mubr.msk.f32.gmra.mrb[22].mxu1 %vm373_vm1, %v1182_v52  ;;  %2319 = vmatprep.mubr.msk.f32.mxu0 %vm373_vm1, %v2494_v6 }
  0x42   : > { %2305 = vmatprep.mubr.msk.f32.mxu1 %vm373_vm1, %v1183_v53 }
  0x44   : > { %2320 = vmatmul.mubr.msk.f32.gmra.mrb[24].mxu0 %vm373_vm1, %v2500_v8 }
  0x45   : > { %2306 = vmatmul.mubr.msk.f32.gmra.mrb[24].mxu1 %vm373_vm1, %v1184_v54  ;;  %2322 = vmatprep.mubr.msk.f32.mxu0 %vm373_vm1, %v2525_v12 }
  0x46   : > { %2308 = vmatprep.mubr.msk.f32.mxu1 %vm373_vm1, %v1185_v55 }
  0x48   : > { %2323 = vmatmul.mubr.msk.f32.gmra.mrb[26].mxu0 %vm373_vm1, %v2095_v57 }
  0x49   : > { %2309 = vmatmul.mubr.msk.f32.gmra.mrb[26].mxu1 %vm373_vm1, %v1186_v56  ;;  %2341 = vmatprep.mubr.msk.f32.mxu0 %vm373_vm1, %v2544_v16 }
  0x4a   : > { %2327 = vmatprep.mubr.msk.f32.mxu1 %vm373_vm1, %v2540_v15 }
  0x4c   : > { %2342 = vmatmul.mubr.msk.f32.vlgmr.msra.gmra.mrb[28].mxu0 %vm373_vm1, %v2550_v18 }
  0x4d   : > { %2328 = vmatmul.mubr.msk.f32.vlgmr.msra.gmra.mrb[28].mxu1 %vm373_vm1, %v2547_v17  ;;  %2344 = vmatprep.mubr.msk.f32.mxu0 %vm373_vm1, %v2569_v22 }
  0x4e   : > { %2330 = vmatprep.mubr.msk.f32.mxu1 %vm373_vm1, %v2565_v21 }
  0x50   : > { %2345 = vmatmul.mubr.msk.f32.gmra.mrb[30].mxu0 %vm373_vm1, %v2578_v24 }
  0x51   : > { %2331 = vmatmul.mubr.msk.f32.gmra.mrb[30].mxu1 %vm373_vm1, %v2572_v23  ;;  %2347 = vmatprep.mubr.msk.f32.mxu0 %vm373_vm1, %v2594_v26 }
  0x52   : > { %2333 = vmatprep.mubr.msk.f32.mxu1 %vm373_vm1, %v2589_v25 }
  0x54   : > { %2348 = vmatmul.mubr.msk.f32.gmra.mrb[32].mxu0 %vm373_vm1, %v2600_v28 }
  0x55   : > { %2334 = vmatmul.mubr.msk.f32.gmra.mrb[32].mxu1 %vm373_vm1, %v2597_v27  ;;  %2350 = vmatprep.mubr.msk.f32.mxu0 %vm373_vm1, %v2626_v30 }
  0x56   : > { %2336 = vmatprep.mubr.msk.f32.mxu1 %vm373_vm1, %v2621_v29 }
  0x58   : > { %2351 = vmatmul.mubr.msk.f32.gmra.mrb[34].mxu0 %vm373_vm1, %v2131_v59 }
  0x59   : > { %2337 = vmatmul.mubr.msk.f32.gmra.mrb[34].mxu1 %vm373_vm1, %v2113_v58 }
  0xe7   : > { %v2231_v60 = vpop.f32.mrb[0].mxu0 }
  0xe8   : > { %v2237_v61 = vpop.f32.mrb[0].mxu1  ;;  %508 = vst.msk [vmem:[#allocation2 + $0x8] sm:$0xff] %vm373_vm1, %v2231_v60  ;;  %v468_v62 = vpop.f32.mrb[1].mxu0 }
  0xe9   : > { %512 = vst.msk [vmem:[#allocation2 + $0x28] sm:$0xff] %vm373_vm1, %v2237_v61  ;;  %v488_v63 = vpop.f32.mrb[1].mxu1  ;;  %507 = vst.msk [vmem:[#allocation2] sm:$0xff] %vm373_vm1, %v468_v62 }
  0xea   : > { %511 = vst.msk [vmem:[#allocation2 + $0x20] sm:$0xff] %vm373_vm1, %v488_v63 }
  0xeb   : > { %v2234_v0 = vpop.f32.mrb[2].mxu0 }
  0xec   : > { %v2240_v1 = vpop.f32.mrb[2].mxu1  ;;  %510 = vst.msk [vmem:[#allocation2 + $0x18] sm:$0xff] %vm373_vm1, %v2234_v0  ;;  %v478_v2 = vpop.f32.mrb[3].mxu0 }
  0xed   : > { %514 = vst.msk [vmem:[#allocation2 + $0x38] sm:$0xff] %vm373_vm1, %v2240_v1  ;;  %v498_v3 = vpop.f32.mrb[3].mxu1  ;;  %509 = vst.msk [vmem:[#allocation2 + $0x10] sm:$0xff] %vm373_vm1, %v478_v2 }
  0xee   : > { %513 = vst.msk [vmem:[#allocation2 + $0x30] sm:$0xff] %vm373_vm1, %v498_v3 }
  0xef   : > { %v658_v5 = vld [vmem:[#allocation2 + $0x8] sm:$0xff]  ;;  %v2259_v6 = vpop.f32.mrb[4].mxu0 }
  0xf0   : > { %v2245_v4 = vpop.f32.mrb[4].mxu1  ;;  %v657_v9 = vld [vmem:[#allocation2] sm:$0xff]  ;;  %v784_v10 = vpop.f32.mrb[5].mxu0  ;;  %v662_v21 = vld [vmem:[#allocation2 + $0x28] sm:$0xff] }
  0xf1   : > { %v666_v7 = vadd.f32 %v2245_v4, %v658_v5  ;;  %v618_v8 = vpop.f32.mrb[5].mxu1  ;;  %v661_v25 = vld [vmem:[#allocation2 + $0x20] sm:$0xff] }
  0xf2   : > { %v665_v11 = vadd.f32 %v657_v9, %v618_v8 }
  0xf3   : > { %674 = vst.msk [vmem:[#allocation2 + $0x8] sm:$0xff] %vm373_vm1, %v666_v7  ;;  %v660_v13 = vld [vmem:[#allocation2 + $0x18] sm:$0xff]  ;;  %v2262_v14 = vpop.f32.mrb[6].mxu0 }
  0xf4   : > { %673 = vst.msk [vmem:[#allocation2] sm:$0xff] %vm373_vm1, %v665_v11  ;;  %v2248_v12 = vpop.f32.mrb[6].mxu1  ;;  %v659_v17 = vld [vmem:[#allocation2 + $0x10] sm:$0xff]  ;;  %v794_v18 = vpop.f32.mrb[7].mxu0  ;;  %v664_v33 = vld [vmem:[#allocation2 + $0x38] sm:$0xff] }
  0xf5   : > { %v668_v15 = vadd.f32 %v2248_v12, %v660_v13  ;;  %v628_v16 = vpop.f32.mrb[7].mxu1  ;;  %v663_v37 = vld [vmem:[#allocation2 + $0x30] sm:$0xff] }
  0xf6   : > { %v667_v19 = vadd.f32 %v659_v17, %v628_v16 }
  0xf7   : > { %676 = vst.msk [vmem:[#allocation2 + $0x18] sm:$0xff] %vm373_vm1, %v668_v15  ;;  %v2265_v22 = vpop.f32.mrb[8].mxu0 }
  0xf8   : > { %675 = vst.msk [vmem:[#allocation2 + $0x10] sm:$0xff] %vm373_vm1, %v667_v19  ;;  %v2251_v20 = vpop.f32.mrb[8].mxu1  ;;  %v804_v26 = vpop.f32.mrb[9].mxu0 }
  0xf9   : > { %v670_v23 = vadd.f32 %v2251_v20, %v662_v21  ;;  %v638_v24 = vpop.f32.mrb[9].mxu1 }
  0xfa   : > { %v669_v27 = vadd.f32 %v661_v25, %v638_v24  ;;  %v824_v28 = vld [vmem:[#allocation2 + $0x8] sm:$0xff] }
  0xfb   : > { %678 = vst.msk [vmem:[#allocation2 + $0x28] sm:$0xff] %vm373_vm1, %v670_v23  ;;  %v832_v29 = vadd.f32 %v2259_v6, %v824_v28  ;;  %v823_v30 = vld [vmem:[#allocation2] sm:$0xff]  ;;  %v2268_v34 = vpop.f32.mrb[10].mxu0 }
  0xfc   : > { %677 = vst.msk [vmem:[#allocation2 + $0x20] sm:$0xff] %vm373_vm1, %v669_v27  ;;  %v831_v31 = vadd.f32 %v823_v30, %v784_v10  ;;  %v2254_v32 = vpop.f32.mrb[10].mxu1  ;;  %v814_v38 = vpop.f32.mrb[11].mxu0 }
  0xfd   : > { %840 = vst.msk [vmem:[#allocation2 + $0x8] sm:$0xff] %vm373_vm1, %v832_v29  ;;  %v672_v35 = vadd.f32 %v2254_v32, %v664_v33  ;;  %v648_v36 = vpop.f32.mrb[11].mxu1 }
  0xfe   : > { %839 = vst.msk [vmem:[#allocation2] sm:$0xff] %vm373_vm1, %v831_v31  ;;  %v671_v39 = vadd.f32 %v663_v37, %v648_v36  ;;  %v826_v40 = vld [vmem:[#allocation2 + $0x18] sm:$0xff] }
  0xff   : > { %680 = vst.msk [vmem:[#allocation2 + $0x38] sm:$0xff] %vm373_vm1, %v672_v35  ;;  %v834_v41 = vadd.f32 %v2262_v14, %v826_v40  ;;  %v825_v42 = vld [vmem:[#allocation2 + $0x10] sm:$0xff]  ;;  %v2287_v45 = vpop.f32.mrb[12].mxu0 }
 0x100   : > { %679 = vst.msk [vmem:[#allocation2 + $0x30] sm:$0xff] %vm373_vm1, %v671_v39  ;;  %v833_v43 = vadd.f32 %v825_v42, %v794_v18  ;;  %v2273_v44 = vpop.f32.mrb[12].mxu1  ;;  %v1116_v47 = vpop.f32.mrb[13].mxu0 }
 0x101   : > { %842 = vst.msk [vmem:[#allocation2 + $0x18] sm:$0xff] %vm373_vm1, %v834_v41  ;;  %v950_v46 = vpop.f32.mrb[13].mxu1 }
 0x102   : > { %841 = vst.msk [vmem:[#allocation2 + $0x10] sm:$0xff] %vm373_vm1, %v833_v43  ;;  %v828_v48 = vld [vmem:[#allocation2 + $0x28] sm:$0xff] }
 0x103   : > { %v836_v49 = vadd.f32 %v2265_v22, %v828_v48  ;;  %v827_v50 = vld [vmem:[#allocation2 + $0x20] sm:$0xff]  ;;  %v2290_v54 = vpop.f32.mrb[14].mxu0 }
 0x104   : > { %v835_v51 = vadd.f32 %v827_v50, %v804_v26  ;;  %v990_v52 = vld [vmem:[#allocation2 + $0x8] sm:$0xff]  ;;  %v2276_v53 = vpop.f32.mrb[14].mxu1  ;;  %v1126_v58 = vpop.f32.mrb[15].mxu0 }
 0x105   : > { %844 = vst.msk [vmem:[#allocation2 + $0x28] sm:$0xff] %vm373_vm1, %v836_v49  ;;  %v998_v55 = vadd.f32 %v2273_v44, %v990_v52  ;;  %v989_v56 = vld [vmem:[#allocation2] sm:$0xff]  ;;  %v960_v57 = vpop.f32.mrb[15].mxu1 }
 0x106   : > { %843 = vst.msk [vmem:[#allocation2 + $0x20] sm:$0xff] %vm373_vm1, %v835_v51  ;;  %v997_v59 = vadd.f32 %v989_v56, %v950_v46  ;;  %v830_v60 = vld [vmem:[#allocation2 + $0x38] sm:$0xff] }
 0x107   : > { %1006 = vst.msk [vmem:[#allocation2 + $0x8] sm:$0xff] %vm373_vm1, %v998_v55  ;;  %v838_v61 = vadd.f32 %v2268_v34, %v830_v60  ;;  %v829_v62 = vld [vmem:[#allocation2 + $0x30] sm:$0xff]  ;;  %v2293_v2 = vpop.f32.mrb[16].mxu0 }
 0x108   : > { %1005 = vst.msk [vmem:[#allocation2] sm:$0xff] %vm373_vm1, %v997_v59  ;;  %v837_v63 = vadd.f32 %v829_v62, %v814_v38  ;;  %v992_v0 = vld [vmem:[#allocation2 + $0x18] sm:$0xff]  ;;  %v2279_v1 = vpop.f32.mrb[16].mxu1  ;;  %v1136_v6 = vpop.f32.mrb[17].mxu0 }
 0x109   : > { %846 = vst.msk [vmem:[#allocation2 + $0x38] sm:$0xff] %vm373_vm1, %v838_v61  ;;  %v1000_v3 = vadd.f32 %v2276_v53, %v992_v0  ;;  %v991_v4 = vld [vmem:[#allocation2 + $0x10] sm:$0xff]  ;;  %v970_v5 = vpop.f32.mrb[17].mxu1 }
 0x10a   : > { %845 = vst.msk [vmem:[#allocation2 + $0x30] sm:$0xff] %vm373_vm1, %v837_v63  ;;  %v999_v7 = vadd.f32 %v991_v4, %v960_v57 }
 0x10b   : > { %1008 = vst.msk [vmem:[#allocation2 + $0x18] sm:$0xff] %vm373_vm1, %v1000_v3  ;;  %v2296_v10 = vpop.f32.mrb[18].mxu0 }
 0x10c   : > { %1007 = vst.msk [vmem:[#allocation2 + $0x10] sm:$0xff] %vm373_vm1, %v999_v7  ;;  %v994_v8 = vld [vmem:[#allocation2 + $0x28] sm:$0xff]  ;;  %v2282_v9 = vpop.f32.mrb[18].mxu1  ;;  %v1146_v14 = vpop.f32.mrb[19].mxu0 }
 0x10d   : > { %v1002_v11 = vadd.f32 %v2279_v1, %v994_v8  ;;  %v993_v12 = vld [vmem:[#allocation2 + $0x20] sm:$0xff]  ;;  %v980_v13 = vpop.f32.mrb[19].mxu1 }
 0x10e   : > { %v1001_v15 = vadd.f32 %v993_v12, %v970_v5  ;;  %v1156_v16 = vld [vmem:[#allocation2 + $0x8] sm:$0xff] }
 0x10f   : > { %1010 = vst.msk [vmem:[#allocation2 + $0x28] sm:$0xff] %vm373_vm1, %v1002_v11  ;;  %v1164_v17 = vadd.f32 %v2287_v45, %v1156_v16  ;;  %v1155_v18 = vld [vmem:[#allocation2] sm:$0xff]  ;;  %v2315_v22 = vpop.f32.mrb[20].mxu0 }
 0x110   : > { %1009 = vst.msk [vmem:[#allocation2 + $0x20] sm:$0xff] %vm373_vm1, %v1001_v15  ;;  %v1163_v19 = vadd.f32 %v1155_v18, %v1116_v47  ;;  %v996_v20 = vld [vmem:[#allocation2 + $0x38] sm:$0xff]  ;;  %v2301_v21 = vpop.f32.mrb[20].mxu1  ;;  %v1449_v26 = vpop.f32.mrb[21].mxu0 }
 0x111   : > { %1172 = vst.msk [vmem:[#allocation2 + $0x8] sm:$0xff] %vm373_vm1, %v1164_v17  ;;  %v1004_v23 = vadd.f32 %v2282_v9, %v996_v20  ;;  %v995_v24 = vld [vmem:[#allocation2 + $0x30] sm:$0xff]  ;;  %v1282_v25 = vpop.f32.mrb[21].mxu1 }
 0x112   : > { %1171 = vst.msk [vmem:[#allocation2] sm:$0xff] %vm373_vm1, %v1163_v19  ;;  %v1003_v27 = vadd.f32 %v995_v24, %v980_v13  ;;  %v1158_v28 = vld [vmem:[#allocation2 + $0x18] sm:$0xff] }
 0x113   : > { %1012 = vst.msk [vmem:[#allocation2 + $0x38] sm:$0xff] %vm373_vm1, %v1004_v23  ;;  %v1166_v29 = vadd.f32 %v2290_v54, %v1158_v28  ;;  %v1157_v30 = vld [vmem:[#allocation2 + $0x10] sm:$0xff]  ;;  %v2774_v33 = vpop.f32.mrb[22].mxu0 }
 0x114   : > { %1011 = vst.msk [vmem:[#allocation2 + $0x30] sm:$0xff] %vm373_vm1, %v1003_v27  ;;  %v1165_v31 = vadd.f32 %v1157_v30, %v1126_v58  ;;  %v2304_v32 = vpop.f32.mrb[22].mxu1  ;;  %v2777_v35 = vpop.f32.mrb[23].mxu0 }
 0x115   : > { %1174 = vst.msk [vmem:[#allocation2 + $0x18] sm:$0xff] %vm373_vm1, %v1166_v29  ;;  %v1292_v34 = vpop.f32.mrb[23].mxu1 }
 0x116   : > { %1173 = vst.msk [vmem:[#allocation2 + $0x10] sm:$0xff] %vm373_vm1, %v1165_v31  ;;  %v1160_v36 = vld [vmem:[#allocation2 + $0x28] sm:$0xff] }
 0x117   : > { %v1168_v37 = vadd.f32 %v2293_v2, %v1160_v36  ;;  %v1159_v38 = vld [vmem:[#allocation2 + $0x20] sm:$0xff]  ;;  %v2780_v42 = vpop.f32.mrb[24].mxu0 }
 0x118   : > { %v1167_v39 = vadd.f32 %v1159_v38, %v1136_v6  ;;  %v1322_v40 = vld [vmem:[#allocation2 + $0x8] sm:$0xff]  ;;  %v2307_v41 = vpop.f32.mrb[24].mxu1  ;;  %v1469_v46 = vpop.f32.mrb[25].mxu0 }
 0x119   : > { %1176 = vst.msk [vmem:[#allocation2 + $0x28] sm:$0xff] %vm373_vm1, %v1168_v37  ;;  %v1330_v43 = vadd.f32 %v2301_v21, %v1322_v40  ;;  %v1321_v44 = vld [vmem:[#allocation2] sm:$0xff]  ;;  %v1302_v45 = vpop.f32.mrb[25].mxu1 }
 0x11a   : > { %1175 = vst.msk [vmem:[#allocation2 + $0x20] sm:$0xff] %vm373_vm1, %v1167_v39  ;;  %v1329_v47 = vadd.f32 %v1321_v44, %v1282_v25  ;;  %v1162_v48 = vld [vmem:[#allocation2 + $0x38] sm:$0xff] }
 0x11b   : > { %1338 = vst.msk [vmem:[#allocation2 + $0x8] sm:$0xff] %vm373_vm1, %v1330_v43  ;;  %v1170_v49 = vadd.f32 %v2296_v10, %v1162_v48  ;;  %v1161_v50 = vld [vmem:[#allocation2 + $0x30] sm:$0xff]  ;;  %v2324_v54 = vpop.f32.mrb[26].mxu0 }
 0x11c   : > { %1337 = vst.msk [vmem:[#allocation2] sm:$0xff] %vm373_vm1, %v1329_v47  ;;  %v1169_v51 = vadd.f32 %v1161_v50, %v1146_v14  ;;  %v1324_v52 = vld [vmem:[#allocation2 + $0x18] sm:$0xff]  ;;  %v2310_v53 = vpop.f32.mrb[26].mxu1  ;;  %v1479_v58 = vpop.f32.mrb[27].mxu0 }
 0x11d   : > { %1178 = vst.msk [vmem:[#allocation2 + $0x38] sm:$0xff] %vm373_vm1, %v1170_v49  ;;  %v1332_v55 = vadd.f32 %v2304_v32, %v1324_v52  ;;  %v1323_v56 = vld [vmem:[#allocation2 + $0x10] sm:$0xff]  ;;  %v1312_v57 = vpop.f32.mrb[27].mxu1 }
 0x11e   : > { %1177 = vst.msk [vmem:[#allocation2 + $0x30] sm:$0xff] %vm373_vm1, %v1169_v51  ;;  %v1331_v59 = vadd.f32 %v1323_v56, %v1292_v34 }
 0x11f   : > { %1340 = vst.msk [vmem:[#allocation2 + $0x18] sm:$0xff] %vm373_vm1, %v1332_v55  ;;  %v2790_v62 = vpop.f32.mrb[28].mxu0 }
 0x120   : > { %1339 = vst.msk [vmem:[#allocation2 + $0x10] sm:$0xff] %vm373_vm1, %v1331_v59  ;;  %v1326_v60 = vld [vmem:[#allocation2 + $0x28] sm:$0xff]  ;;  %v2329_v61 = vpop.f32.mrb[28].mxu1  ;;  %v2792_v2 = vpop.f32.mrb[29].mxu0 }
 0x121   : > { %v1334_v63 = vadd.f32 %v2307_v41, %v1326_v60  ;;  %v1325_v0 = vld [vmem:[#allocation2 + $0x20] sm:$0xff]  ;;  %v1616_v1 = vpop.f32.mrb[29].mxu1 }
 0x122   : > { %v1333_v3 = vadd.f32 %v1325_v0, %v1302_v45  ;;  %v1489_v4 = vld [vmem:[#allocation2 + $0x8] sm:$0xff]  ;;  %v2142_v60 = vld [vmem:[%s2872_s5] ss:$0 sm:$0xff] }
 0x123   : > { %1342 = vst.msk [vmem:[#allocation2 + $0x28] sm:$0xff] %vm373_vm1, %v1334_v63  ;;  %v1497_v5 = vadd.f32 %v2315_v22, %v1489_v4  ;;  %v1488_v6 = vld [vmem:[#allocation2] sm:$0xff]  ;;  %v2796_v10 = vpop.f32.mrb[30].mxu0 }
 0x124   : > { %1341 = vst.msk [vmem:[#allocation2 + $0x20] sm:$0xff] %vm373_vm1, %v1333_v3  ;;  %v1496_v7 = vadd.f32 %v1488_v6, %v1449_v26  ;;  %v1328_v8 = vld [vmem:[#allocation2 + $0x38] sm:$0xff]  ;;  %v2332_v9 = vpop.f32.mrb[30].mxu1  ;;  %v2799_v14 = vpop.f32.mrb[31].mxu0 }
 0x125   : > { %1505 = vst.msk [vmem:[#allocation2 + $0x8] sm:$0xff] %vm373_vm1, %v1497_v5  ;;  %v1336_v11 = vadd.f32 %v2310_v53, %v1328_v8  ;;  %v1327_v12 = vld [vmem:[#allocation2 + $0x30] sm:$0xff]  ;;  %v1626_v13 = vpop.f32.mrb[31].mxu1 }
 0x126   : > { %1504 = vst.msk [vmem:[#allocation2] sm:$0xff] %vm373_vm1, %v1496_v7  ;;  %v1335_v15 = vadd.f32 %v1327_v12, %v1312_v57  ;;  %v1491_v16 = vld [vmem:[#allocation2 + $0x18] sm:$0xff] }
 0x127   : > { %1344 = vst.msk [vmem:[#allocation2 + $0x38] sm:$0xff] %vm373_vm1, %v1336_v11  ;;  %v1499_v17 = vadd.f32 %v2774_v33, %v1491_v16  ;;  %v1490_v18 = vld [vmem:[#allocation2 + $0x10] sm:$0xff]  ;;  %v2349_v21 = vpop.f32.mrb[32].mxu0 }
 0x128   : > { %1343 = vst.msk [vmem:[#allocation2 + $0x30] sm:$0xff] %vm373_vm1, %v1335_v15  ;;  %v1498_v19 = vadd.f32 %v1490_v18, %v2777_v35  ;;  %v2335_v20 = vpop.f32.mrb[32].mxu1  ;;  %v1802_v23 = vpop.f32.mrb[33].mxu0 }
 0x129   : > { %1507 = vst.msk [vmem:[#allocation2 + $0x18] sm:$0xff] %vm373_vm1, %v1499_v17  ;;  %v1636_v22 = vpop.f32.mrb[33].mxu1 }
 0x12a   : > { %1506 = vst.msk [vmem:[#allocation2 + $0x10] sm:$0xff] %vm373_vm1, %v1498_v19  ;;  %v1493_v24 = vld [vmem:[#allocation2 + $0x28] sm:$0xff] }
 0x12b   : > { %v1501_v25 = vadd.f32 %v2780_v42, %v1493_v24  ;;  %v1492_v26 = vld [vmem:[#allocation2 + $0x20] sm:$0xff]  ;;  %v2352_v30 = vpop.f32.mrb[34].mxu0 }
 0x12c   : > { %v1500_v27 = vadd.f32 %v1492_v26, %v1469_v46  ;;  %v1656_v28 = vld [vmem:[#allocation2 + $0x8] sm:$0xff]  ;;  %v2338_v29 = vpop.f32.mrb[34].mxu1  ;;  %v1812_v34 = vpop.f32.mrb[35].mxu0 }
 0x12d   : > { %1509 = vst.msk [vmem:[#allocation2 + $0x28] sm:$0xff] %vm373_vm1, %v1501_v25  ;;  %v1664_v31 = vadd.f32 %v2329_v61, %v1656_v28  ;;  %v1655_v32 = vld [vmem:[#allocation2] sm:$0xff]  ;;  %v1646_v33 = vpop.f32.mrb[35].mxu1 }
 0x12e   : > { %1508 = vst.msk [vmem:[#allocation2 + $0x20] sm:$0xff] %vm373_vm1, %v1500_v27  ;;  %v1663_v35 = vadd.f32 %v1655_v32, %v1616_v1  ;;  %v1495_v36 = vld [vmem:[#allocation2 + $0x38] sm:$0xff] }
 0x12f   : > { %1672 = vst.msk [vmem:[#allocation2 + $0x8] sm:$0xff] %vm373_vm1, %v1664_v31  ;;  %v1503_v37 = vadd.f32 %v2324_v54, %v1495_v36  ;;  %v1494_v38 = vld [vmem:[#allocation2 + $0x30] sm:$0xff] }
 0x130   : > { %1671 = vst.msk [vmem:[#allocation2] sm:$0xff] %vm373_vm1, %v1663_v35  ;;  %v1502_v39 = vadd.f32 %v1494_v38, %v1479_v58  ;;  %v1658_v40 = vld [vmem:[#allocation2 + $0x18] sm:$0xff] }
 0x131   : > { %1511 = vst.msk [vmem:[#allocation2 + $0x38] sm:$0xff] %vm373_vm1, %v1503_v37  ;;  %v1666_v41 = vadd.f32 %v2332_v9, %v1658_v40  ;;  %v1657_v42 = vld [vmem:[#allocation2 + $0x10] sm:$0xff] }
 0x132   : > { %1510 = vst.msk [vmem:[#allocation2 + $0x30] sm:$0xff] %vm373_vm1, %v1502_v39  ;;  %v1665_v43 = vadd.f32 %v1657_v42, %v1626_v13 }
 0x133   : > { %1674 = vst.msk [vmem:[#allocation2 + $0x18] sm:$0xff] %vm373_vm1, %v1666_v41 }
 0x134   : > { %1673 = vst.msk [vmem:[#allocation2 + $0x10] sm:$0xff] %vm373_vm1, %v1665_v43  ;;  %v1660_v44 = vld [vmem:[#allocation2 + $0x28] sm:$0xff] }
 0x135   : > { %v1668_v45 = vadd.f32 %v2335_v20, %v1660_v44  ;;  %v1659_v46 = vld [vmem:[#allocation2 + $0x20] sm:$0xff] }
 0x136   : > { %v1667_v47 = vadd.f32 %v1659_v46, %v1636_v22  ;;  %v1822_v48 = vld [vmem:[#allocation2 + $0x8] sm:$0xff] }
 0x137   : > { %1676 = vst.msk [vmem:[#allocation2 + $0x28] sm:$0xff] %vm373_vm1, %v1668_v45  ;;  %v1830_v49 = vadd.f32 %v2790_v62, %v1822_v48  ;;  %v1821_v50 = vld [vmem:[#allocation2] sm:$0xff] }
 0x138   : > { %1675 = vst.msk [vmem:[#allocation2 + $0x20] sm:$0xff] %vm373_vm1, %v1667_v47  ;;  %v1829_v51 = vadd.f32 %v1821_v50, %v2792_v2  ;;  %v1662_v52 = vld [vmem:[#allocation2 + $0x38] sm:$0xff] }
 0x139   : > { %1838 = vst.msk [vmem:[#allocation2 + $0x8] sm:$0xff] %vm373_vm1, %v1830_v49  ;;  %v1670_v53 = vadd.f32 %v2338_v29, %v1662_v52  ;;  %v1661_v54 = vld [vmem:[#allocation2 + $0x30] sm:$0xff] }
 0x13a   : > { %1837 = vst.msk [vmem:[#allocation2] sm:$0xff] %vm373_vm1, %v1829_v51  ;;  %v1669_v55 = vadd.f32 %v1661_v54, %v1646_v33  ;;  %v1824_v56 = vld [vmem:[#allocation2 + $0x18] sm:$0xff] }
 0x13b   : > { %1678 = vst.msk [vmem:[#allocation2 + $0x38] sm:$0xff] %vm373_vm1, %v1670_v53  ;;  %v1832_v57 = vadd.f32 %v2796_v10, %v1824_v56  ;;  %v1823_v58 = vld [vmem:[#allocation2 + $0x10] sm:$0xff] }
 0x13c   : > { %1677 = vst.msk [vmem:[#allocation2 + $0x30] sm:$0xff] %vm373_vm1, %v1669_v55  ;;  %v1831_v59 = vadd.f32 %v1823_v58, %v2799_v14 }
 0x13d   : > { %1840 = vst.msk [vmem:[#allocation2 + $0x18] sm:$0xff] %vm373_vm1, %v1832_v57 }
 0x13e   : > { %1839 = vst.msk [vmem:[#allocation2 + $0x10] sm:$0xff] %vm373_vm1, %v1831_v59  ;;  %v1826_v61 = vld [vmem:[#allocation2 + $0x28] sm:$0xff] }
 0x13f   : > { %v1834_v62 = vadd.f32 %v2349_v21, %v1826_v61  ;;  %v1825_v63 = vld [vmem:[#allocation2 + $0x20] sm:$0xff] }
 0x140   : > { %v1846_v0 = vld [vmem:[#allocation2 + $0x8] sm:$0xff]  ;;  %v1833_v1 = vadd.f32 %v1825_v63, %v1802_v23 }
 0x141   : > { %v1860_v2 = vadd.f32 %v2142_v60, %v1846_v0  ;;  %v1845_v3 = vld [vmem:[#allocation2] sm:$0xff]  ;;  %1842 = vst.msk [vmem:[#allocation2 + $0x28] sm:$0xff] %vm373_vm1, %v1834_v62 }
 0x142   : > { %v1859_v4 = vadd.f32 %v2142_v60, %v1845_v3  ;;  %1841 = vst.msk [vmem:[#allocation2 + $0x20] sm:$0xff] %vm373_vm1, %v1833_v1  ;;  %v1828_v5 = vld [vmem:[#allocation2 + $0x38] sm:$0xff] }
 0x143   : > { %1868 = vst.msk [vmem:[%s2836_s17 + $0x8] sm:$0xff] %vm373_vm1, %v1860_v2  ;;  %v1836_v6 = vadd.f32 %v2352_v30, %v1828_v5  ;;  %v1827_v7 = vld [vmem:[#allocation2 + $0x30] sm:$0xff] }
 0x144   : > { %1867 = vst.msk [vmem:[%s2836_s17] sm:$0xff] %vm373_vm1, %v1859_v4  ;;  %v1848_v8 = vld [vmem:[#allocation2 + $0x18] sm:$0xff]  ;;  %v1835_v9 = vadd.f32 %v1827_v7, %v1812_v34 }
 0x145   : > { %v1862_v10 = vadd.f32 %v2142_v60, %v1848_v8  ;;  %v1847_v11 = vld [vmem:[#allocation2 + $0x10] sm:$0xff]  ;;  %1844 = vst.msk [vmem:[#allocation2 + $0x38] sm:$0xff] %vm373_vm1, %v1836_v6 }
 0x146   : > { %v1861_v12 = vadd.f32 %v2142_v60, %v1847_v11  ;;  %1843 = vst.msk [vmem:[#allocation2 + $0x30] sm:$0xff] %vm373_vm1, %v1835_v9 }
 0x147   : > { %1870 = vst.msk [vmem:[%s2836_s17 + $0x18] sm:$0xff] %vm373_vm1, %v1862_v10 }
 0x148   : > { %1869 = vst.msk [vmem:[%s2836_s17 + $0x10] sm:$0xff] %vm373_vm1, %v1861_v12  ;;  %v1850_v13 = vld [vmem:[#allocation2 + $0x28] sm:$0xff] }
 0x149   : > { %v1864_v14 = vadd.f32 %v2142_v60, %v1850_v13  ;;  %v1849_v15 = vld [vmem:[#allocation2 + $0x20] sm:$0xff] }
 0x14a   : > { %v1863_v16 = vadd.f32 %v2142_v60, %v1849_v15 }
 0x14b   : > { %1872 = vst.msk [vmem:[%s2836_s17 + $0x28] sm:$0xff] %vm373_vm1, %v1864_v14 }
 0x14c   : > { %1871 = vst.msk [vmem:[%s2836_s17 + $0x20] sm:$0xff] %vm373_vm1, %v1863_v16  ;;  %v1852_v17 = vld [vmem:[#allocation2 + $0x38] sm:$0xff] }
 0x14d   : > { %v1866_v18 = vadd.f32 %v2142_v60, %v1852_v17  ;;  %v1851_v19 = vld [vmem:[#allocation2 + $0x30] sm:$0xff] }
 0x14e   : > { %v1865_v20 = vadd.f32 %v2142_v60, %v1851_v19 }
 0x14f   : > { %1874 = vst.msk [vmem:[%s2836_s17 + $0x38] sm:$0xff] %vm373_vm1, %v1866_v18 }
 0x150   : > { %1873 = vst.msk [vmem:[%s2836_s17 + $0x30] sm:$0xff] %vm373_vm1, %v1865_v20 }
 0x151 PF: > { %s16_s23 = sadd.s32 1, %s2402_s23   ;;  %s2874_s21 = smov %s2398_s22 }
 0x152   : > { %p13_p5 = scmp.ge.s32.totalorder %s16_s23, 4   ;;  %s2875_s22 = smov %s2877_s24 }
 0x154   :  { %15 = sbr.rel (!%p13_p5) target bundleno = 2 (0x2), region = 99 }

</bundles_post_ra>
